<compile_context>
chip_gen: v5e
topology: v5e:2x2
jax: 0.10.0
libtpu: 0.0.40
codegen_flags: <defaults>
</compile_context>

<pallas_src>
from typing import NamedTuple

import jax
import jax.numpy as jnp
from jax.experimental import pallas as pl
from jax.experimental.pallas import tpu as pltpu


def _round_up(x, m):
    return ((x + m - 1) // m) * m


def _pick_tile(padded_dim, max_tile, min_tiles=1):
    """Largest multiple of 128 <= max_tile that divides `padded_dim` (itself a
    multiple of 128), preferring at least `min_tiles` tiles when possible."""
    t = min(max_tile, padded_dim)
    while padded_dim % t != 0:
        t -= 128
    while padded_dim // t < min_tiles and t > 128:
        t -= 128
        while padded_dim % t != 0 and t > 128:
            t -= 128
    return t


# ----------------------------- kernels --------------------------------------


def _rnncell_kernel_single_k(xh_ref, w_ref, bias_ref, out_ref):
    # Whole reduction in one tile: single MXU contraction, bias add, tanh.
    acc = jnp.dot(xh_ref[...], w_ref[...], preferred_element_type=jnp.float32)
    acc += bias_ref[...].astype(jnp.float32)          # [1, tn] broadcasts to [tm, tn]
    out_ref[...] = jnp.tanh(acc).astype(out_ref.dtype)


def _rnncell_kernel_multi_k(xh_ref, w_ref, bias_ref, out_ref, acc_ref):
    # Grid = (B tiles, H tiles, K tiles); K (reduction) is the last axis.
    @pl.when(pl.program_id(2) == 0)
    def _():
        # Fused bias rides in the accumulator: broadcast [1, tn] -> [tm, tn].
        acc_ref[...] = jnp.broadcast_to(
            bias_ref[...].astype(jnp.float32), acc_ref.shape
        )

    acc_ref[...] += jnp.dot(
        xh_ref[...], w_ref[...], preferred_element_type=jnp.float32
    )

    @pl.when(pl.program_id(2) == pl.num_programs(2) - 1)
    def _():
        out_ref[...] = jnp.tanh(acc_ref[...]).astype(out_ref.dtype)


# ----------------------------- parameter prep (run once) --------------------


class RNNCellParams(NamedTuple):
    w: jax.Array        # [Kp, Hp] fused, pre-transposed, padded, compute dtype
    bias: jax.Array     # [1, Hp]  fused bias (b_ih + b_hh), f32, padded
    input_size: int
    hidden_size: int
    tn: int
    tk: int


def prepare_rnncell_params(w_ih, w_hh, b_ih, b_hh, *,
                           compute_dtype=jnp.bfloat16,
                           max_tn=512, max_tk=512):
    """Hoisted, one-time weight preparation (do NOT call per timestep)."""
    H, I = w_ih.shape
    K = I + H
    Hp = _round_up(H, 128)
    Kp = _round_up(K, 128)

    # Prefer >= 2 H tiles so both v7x TensorCores are used even when the batch
    # axis has a single tile (typical small-batch RNN cell). No-op on v5e/v6e.
    tn = _pick_tile(Hp, max_tn, min_tiles=2)
    tk = _pick_tile(Kp, max_tk, min_tiles=1)

    w = jnp.concatenate([w_ih.T, w_hh.T], axis=0)                  # [K, H]
    w_p = jnp.pad(w, ((0, Kp - K), (0, Hp - H))).astype(compute_dtype)
    bias = (b_ih + b_hh).reshape(1, H).astype(jnp.float32)
    bias_p = jnp.pad(bias, ((0, 0), (0, Hp - H)))
    return RNNCellParams(w_p, bias_p, int(I), int(H), int(tn), int(tk))


# ----------------------------- per-call wrapper ------------------------------


def rnn_cell_pallas(x, h, params: RNNCellParams, *, max_tm=256):
    B, I = x.shape
    assert I == params.input_size
    H = params.hidden_size
    K = I + H
    Kp, Hp = params.w.shape
    tn, tk = params.tn, params.tk

    tm = min(max_tm, _round_up(B, 8))
    Bp = _round_up(B, tm)

    # Per-call operand prep: only the activations. Padded K columns are zero
    # and contribute 0 to the contraction; padded B rows are sliced off.
    xh = jnp.concatenate([x, h], axis=1)                           # [B, K]
    xh_p = jnp.pad(xh, ((0, Bp - B), (0, Kp - K))).astype(params.w.dtype)

    grid_k = Kp // tk
    out_shape = jax.ShapeDtypeStruct((Bp, Hp), x.dtype)

    if grid_k == 1:
        # Single-K-tile fast path: no accumulator scratch, no branches.
        out = pl.pallas_call(
            _rnncell_kernel_single_k,
            out_shape=out_shape,
            grid_spec=pltpu.PrefetchScalarGridSpec(
                num_scalar_prefetch=0,
                grid=(Bp // tm, Hp // tn),
                in_specs=[
                    pl.BlockSpec((tm, tk), lambda i, j: (i, 0)),   # [x|h] tile
                    pl.BlockSpec((tk, tn), lambda i, j: (0, j)),   # fused W tile
                    pl.BlockSpec((1, tn), lambda i, j: (0, j)),    # fused bias
                ],
                out_specs=pl.BlockSpec((tm, tn), lambda i, j: (i, j)),
            ),
            compiler_params=pltpu.CompilerParams(
                dimension_semantics=("parallel", "parallel"),
            ),
        )(xh_p, params.w, params.bias)
    else:
        out = pl.pallas_call(
            _rnncell_kernel_multi_k,
            out_shape=out_shape,
            grid_spec=pltpu.PrefetchScalarGridSpec(
                num_scalar_prefetch=0,
                grid=(Bp // tm, Hp // tn, grid_k),
                in_specs=[
                    pl.BlockSpec((tm, tk), lambda i, j, k: (i, k)),
                    pl.BlockSpec((tk, tn), lambda i, j, k: (k, j)),
                    pl.BlockSpec((1, tn), lambda i, j, k: (0, j)),
                ],
                out_specs=pl.BlockSpec((tm, tn), lambda i, j, k: (i, j)),
                scratch_shapes=[pltpu.VMEM((tm, tn), jnp.float32)],
            ),
            compiler_params=pltpu.CompilerParams(
                dimension_semantics=("parallel", "parallel", "arbitrary"),
            ),
        )(xh_p, params.w, params.bias)

    return out[:B, :H]


def reference(x, h, w_ih, w_hh, b_ih, b_hh):
    return jnp.tanh(x @ w_ih.T + b_ih + h @ w_hh.T + b_hh)


# ----------------------------- tests ----------------------------------------


def _make_inputs(key, B, I, H):
    kx, k1, k2, k3, k4 = jax.random.split(key, 5)
    bound = 1.0 / jnp.sqrt(jnp.float32(H))
    w_ih = jax.random.uniform(k1, (H, I), jnp.float32, -bound, bound)
    w_hh = jax.random.uniform(k2, (H, H), jnp.float32, -bound, bound)
    b_ih = jax.random.uniform(k3, (H,), jnp.float32, -bound, bound)
    b_hh = jax.random.uniform(k4, (H,), jnp.float32, -bound, bound)
    x = jax.random.normal(kx, (B, I), jnp.float32)
    h0 = jnp.zeros((B, H), jnp.float32)                 # init_hidden()
    return x, h0, w_ih, w_hh, b_ih, b_hh


if __name__ == "__main__":
    key = jax.random.PRNGKey(0)
    k_small, k_big = jax.random.split(key, 2)

    # --- 1) Module-consistent shapes: batch=1, input=4, hidden=2 ------------
    batch_size, input_size, hidden_size = 1, 4, 2
    x, h0, w_ih, w_hh, b_ih, b_hh = _make_inputs(
        k_small, batch_size, input_size, hidden_size)
    ref = reference(x, h0, w_ih, w_hh, b_ih, b_hh)

    # f32 compute path (exactness check).
    params_f32 = prepare_rnncell_params(
        w_ih, w_hh, b_ih, b_hh, compute_dtype=jnp.float32)
    out_f32 = jax.block_until_ready(rnn_cell_pallas(x, h0, params_f32))
    assert out_f32.shape == (batch_size, hidden_size)
    assert jnp.allclose(out_f32, ref, atol=1e-5, rtol=1e-5)

    # Default bf16 streaming path (memory-bandwidth optimized).
    params_bf16 = prepare_rnncell_params(w_ih, w_hh, b_ih, b_hh)
    out_bf16 = jax.block_until_ready(rnn_cell_pallas(x, h0, params_bf16))
    assert out_bf16.shape == (batch_size, hidden_size)
    assert jnp.allclose(out_bf16, ref, atol=3e-2, rtol=3e-2)

    # --- 2) Tiled-path validation: K > tk, H > tn, multi-tile grid ----------
    Bt, It, Ht = 16, 640, 640          # K = 1280 -> multiple K tiles; H -> 5 tiles
    xt, ht, w_iht, w_hht, b_iht, b_hht = _make_inputs(k_big, Bt, It, Ht)
    params_t = prepare_rnncell_params(
        w_iht, w_hht, b_iht, b_hht, compute_dtype=jnp.float32)
    out_t = jax.block_until_ready(rnn_cell_pallas(xt, ht, params_t))
    ref_t = reference(xt, ht, w_iht, w_hht, b_iht, b_hht)
    assert out_t.shape == (Bt, Ht)
    assert jnp.allclose(out_t, ref_t, atol=1e-4, rtol=1e-4)

    print("KERNEL_OK")
</pallas_src>

<mosaic_0001>
module attributes {stable_mosaic.version = 11 : i64} {
  func.func @_rnncell_kernel_single_k(%arg0: i32, %arg1: i32, %arg2: memref<8x128xf32, #tpu.memory_space<vmem>>, %arg3: memref<128x128xf32, #tpu.memory_space<vmem>>, %arg4: memref<1x128xf32, #tpu.memory_space<vmem>>, %arg5: memref<8x128xf32, #tpu.memory_space<vmem>>) attributes {dimension_semantics = [#tpu.dimension_semantics<parallel>, #tpu.dimension_semantics<parallel>], iteration_bounds = array<i64: 1, 1>, scalar_prefetch = 0 : i64, scratch_operands = 0 : i64, tpu.core_type = #tpu.core_type<tc>, window_params = [{transform_indices = @transform_0, window_bounds = array<i64: 8, 128>}, {transform_indices = @transform_1, window_bounds = array<i64: 128, 128>}, {transform_indices = @transform_2, window_bounds = array<i64: 1, 128>}, {transform_indices = @transform_3, window_bounds = array<i64: 8, 128>}]} {
    %c0 = arith.constant 0 : index
    %c0_0 = arith.constant 0 : index
    %0 = vector.load %arg2[%c0, %c0_0] : memref<8x128xf32, #tpu.memory_space<vmem>>, vector<8x128xf32>
    %c0_1 = arith.constant 0 : index
    %c0_2 = arith.constant 0 : index
    %1 = vector.load %arg3[%c0_1, %c0_2] : memref<128x128xf32, #tpu.memory_space<vmem>>, vector<128x128xf32>
    %cst = arith.constant dense<0.000000e+00> : vector<8x128xf32>
    %2 = tpu.matmul %0, %1, %cst {dimension_numbers = #tpu.dot_dimension_numbers<[1], [0], [0], [1], [0, 0, 1, 1], [], []>} : vector<8x128xf32>, vector<128x128xf32>, vector<8x128xf32> -> vector<8x128xf32>
    %c0_3 = arith.constant 0 : index
    %c0_4 = arith.constant 0 : index
    %3 = vector.load %arg4[%c0_3, %c0_4] : memref<1x128xf32, #tpu.memory_space<vmem>>, vector<1x128xf32>
    %4 = vector.broadcast %3 : vector<1x128xf32> to vector<8x128xf32>
    %5 = arith.addf %2, %4 : vector<8x128xf32>
    %6 = math.tanh %5 : vector<8x128xf32>
    %c0_5 = arith.constant 0 : index
    %c0_6 = arith.constant 0 : index
    %7 = vector.load %arg5[%c0_5, %c0_6] : memref<8x128xf32, #tpu.memory_space<vmem>>, vector<8x128xf32>
    tpu.vector_store %arg5[%c0_5, %c0_6], %6 {strides = array<i32>} : memref<8x128xf32, #tpu.memory_space<vmem>>, vector<8x128xf32>,
    return
  }
  func.func @transform_0(%arg0: i32, %arg1: i32) -> (i32, i32) {
    %c0_i32 = arith.constant 0 : i32
    %c0_i32_0 = arith.constant 0 : i32
    return %arg0, %c0_i32 : i32, i32
  }
  func.func @transform_1(%arg0: i32, %arg1: i32) -> (i32, i32) {
    %c0_i32 = arith.constant 0 : i32
    %c0_i32_0 = arith.constant 0 : i32
    return %c0_i32, %arg1 : i32, i32
  }
  func.func @transform_2(%arg0: i32, %arg1: i32) -> (i32, i32) {
    %c0_i32 = arith.constant 0 : i32
    %c0_i32_0 = arith.constant 0 : i32
    return %c0_i32, %arg1 : i32, i32
  }
  func.func @transform_3(%arg0: i32, %arg1: i32) -> (i32, i32) {
    %c0_i32 = arith.constant 0 : i32
    return %arg0, %arg1 : i32, i32
  }
}

</mosaic_0001>

<bundles_post_ra>
// kernel: tpu_custom_call.1
= control target key start
LH: loop header
LB: loop body
LE: loop exit
PB: predicated region body
PF: predicated region fallthrough
CT: control target
= control target key end

     0   :  { %8 = vsyncpa [#allocation3], 0  ;;  %s229_s0 = inlined_call_operand.hbm [shape: f32[8,128], index: 0, kind: input, shape index: {}]   ;;  %s230_s1 = inlined_call_operand.hbm [shape: f32[128,128], index: 1, kind: input, shape index: {}]   ;;  %s231_s2 = inlined_call_operand.vmem [shape: f32[1,128], index: 2, kind: input, shape index: {}]   ;;  %s232_s3 = inlined_call_operand.hbm [shape: f32[8,128], index: 3, kind: output, shape index: {}]  }
   0x1   :  { %9 = vsyncpa [#allocation6], 0 }
   0x2   :  { %10 = vsyncpa [#allocation4], 0  ;;  %s16_s14 = sshll.u32 %s229_s0, 4  ;;  %s192_s15 = smov [#allocation2]   ;;  %s17_s14 = int_to_ptr.hbm [resolvable:$true] %s16_s14 }
   0x3   :  { %s18_s16 = sshll.u32 %s192_s15, 4  ;;  %s26_s19 = sshll.u32 %s230_s1, 4  ;;  %s19_s16 = int_to_ptr.vmem [resolvable:$true] %s18_s16  ;;  %s27_s19 = int_to_ptr.hbm [resolvable:$true] %s26_s19 }
   0x4   :  { %21 = dma.hbm_to_vmem [thread:$0]  %s17_s14, 128, %s19_s16, [#allocation3]  }
   0x5   :  { %s193_s20 = smov [#allocation5]   ;;  %s194_s22 = smov 128  }
   0x6   :  { %s28_s21 = sshll.u32 %s193_s20, 4  ;;  %s195_s23 = smov 8   ;;  %s29_s21 = int_to_ptr.vmem [resolvable:$true] %s28_s21 }
   0x7   :  { %34 = dma.hbm_to_vmem [thread:$0]  %s27_s19, 2048, %s29_s21, [#allocation6], %s194_s22, %s194_s22, %s195_s23  }
   0x8   :  { %186 = dma.done.wait [#allocation3], 128  }
   0x9   :  { %187 = vsyncadd [#allocation3], 4294967168 }
   0xa   :  { %188 = dma.done.wait [#allocation6], 2048  }
   0xb   :  { %189 = vsyncadd [#allocation6], 4294965248  ;;  %v61_v0 = vld [vmem:[#allocation5 + $0x78] sm:$0xff]  ;;  %v60_v1 = vld [vmem:[#allocation5 + $0x70] sm:$0xff]  ;;  %s196_s24 = smov [#allocation7]   ;;  %s95_s28 = sshll.u32 %s232_s3, 4  ;;  %s96_s28 = int_to_ptr.hbm [resolvable:$true] %s95_s28 }
   0xc   :  { %66 = vmatpush.msra.mxu0 %v61_v0  ;;  %v59_v2 = vld [vmem:[#allocation5 + $0x68] sm:$0xff]  ;;  %v58_v3 = vld [vmem:[#allocation5 + $0x60] sm:$0xff]  ;;  %v57_v4 = vld [vmem:[#allocation5 + $0x58] sm:$0xff]  ;;  %s93_s25 = sshll.u32 %s196_s24, 4  ;;  %s94_s25 = int_to_ptr.vmem [resolvable:$true] %s93_s25 }
   0xd   :  { %v56_v5 = vld [vmem:[#allocation5 + $0x50] sm:$0xff]  ;;  %v55_v6 = vld [vmem:[#allocation5 + $0x48] sm:$0xff]  ;;  %v54_v7 = vld [vmem:[#allocation5 + $0x40] sm:$0xff] }
   0xe   :  { %67 = vmatpush.msra.mxu0 %v60_v1  ;;  %v53_v8 = vld [vmem:[#allocation5 + $0x38] sm:$0xff]  ;;  %v52_v9 = vld [vmem:[#allocation5 + $0x30] sm:$0xff]  ;;  %v51_v10 = vld [vmem:[#allocation5 + $0x28] sm:$0xff] }
   0xf   :  { %v50_v11 = vld [vmem:[#allocation5 + $0x20] sm:$0xff]  ;;  %v49_v12 = vld [vmem:[#allocation5 + $0x18] sm:$0xff]  ;;  %v48_v13 = vld [vmem:[#allocation5 + $0x10] sm:$0xff] }
  0x10   :  { %68 = vmatpush.msra.mxu0 %v59_v2  ;;  %v47_v14 = vld [vmem:[#allocation5 + $0x8] sm:$0xff]  ;;  %v46_v15 = vld [vmem:[#allocation5] sm:$0xff]  ;;  %v45_v16 = vld [vmem:[#allocation2] sm:$0xff] }
  0x11   :  { %v111_v17 = vld [vmem:[%s231_s2] ss:$0 sm:$0xff] }
  0x12   :  { %69 = vmatpush.msra.mxu0 %v58_v3 }
  0x14   :  { %70 = vmatpush.msra.mxu0 %v57_v4 }
  0x16   :  { %71 = vmatpush.msra.mxu0 %v56_v5 }
  0x18   :  { %72 = vmatpush.msra.mxu0 %v55_v6 }
  0x1a   :  { %73 = vmatpush.msra.mxu0 %v54_v7 }
  0x1c   :  { %74 = vmatpush.msra.mxu0 %v53_v8 }
  0x1e   :  { %75 = vmatpush.msra.mxu0 %v52_v9 }
  0x20   :  { %76 = vmatpush.msra.mxu0 %v51_v10 }
  0x22   :  { %77 = vmatpush.msra.mxu0 %v50_v11 }
  0x24   :  { %78 = vmatpush.msra.mxu0 %v49_v12 }
  0x26   :  { %79 = vmatpush.msra.mxu0 %v48_v13 }
  0x28   :  { %80 = vmatpush.msra.mxu0 %v47_v14 }
  0x2a   :  { %81 = vmatpush.msra.mxu0 %v46_v15 }
  0x2b   :  { %82 = vmatmul.f32.vlgmr.msra.gmra.mxu0 %v45_v16 }
  0xa8   :  { %v83_v18 = vpop.f32.mrf.mxu0 }
  0xa9   :  { %v84_v19 = vadd.f32 %v111_v17, %v83_v18 }
  0xab   :  { %112 = vtanh.f32 %v84_v19 }
  0xb1   :  { %v113_v20 = vpop.eup %112 }
  0xb2   :  { %87 = vst [vmem:[#allocation7] sm:$0xff] %v113_v20 }
  0xb3   :  { %98 = dma.vmem_to_hbm [thread:$0]  %s94_s25, 128, %s96_s28, [#allocation4]  }
  0xb4   :  { %190 = dma.done.wait [#allocation4], 128  }
  0xb5   :  { %191 = vsyncadd [#allocation4], 4294967168 }
  0xb6   :  { %103 = vsyncpa [#allocation3], 1 }
  0xb7   :  { %104 = vsyncpa [#allocation6], 1 }
  0xb8   :  { %105 = vsyncpa [#allocation4], 1 }

</bundles_post_ra>
